<compile_context>
chip_gen: v7x
topology: tpu7x:2x2x1
jax: 0.10.0
libtpu: 0.0.40
codegen_flags: <defaults>
</compile_context>

<pallas_src>
import jax
import jax.numpy as jnp
from jax.experimental import pallas as pl
from jax.experimental.pallas import tpu as pltpu


def _round_up(x, m):
    return (x + m - 1) // m * m


def _leaky_relu(x, slope=0.2):
    # max(x, slope*x) == LeakyReLU for slope in (0, 1); one VALU op.
    return jnp.maximum(x, slope * x)


def mlp4_kernel(x_ref, w1_ref, b1_ref, w2_ref, b2_ref,
                w3_ref, b3_ref, w4_ref, b4_ref, o_ref):
    # One batch tile per grid step; all four layers fused in VMEM.
    # bf16 operands -> MXU, f32 accumulation + f32 elementwise.
    x = x_ref[...]  # bf16 tile

    h = jnp.dot(x, w1_ref[...], preferred_element_type=jnp.float32) + b1_ref[...]
    h = _leaky_relu(h)
    h = jnp.dot(h.astype(jnp.bfloat16), w2_ref[...],
                preferred_element_type=jnp.float32) + b2_ref[...]
    h = _leaky_relu(h)
    h = jnp.dot(h.astype(jnp.bfloat16), w3_ref[...],
                preferred_element_type=jnp.float32) + b3_ref[...]
    h = _leaky_relu(h)
    h = jnp.dot(h.astype(jnp.bfloat16), w4_ref[...],
                preferred_element_type=jnp.float32) + b4_ref[...]

    o_ref[...] = h.astype(o_ref.dtype)  # lane-dense (padded) f32 store


def mlp4_forward(x, params, *, tile_m=None, interpret=False):
    """x: [B, nin] float32. params: dict of pre-transposed f32 weights/biases."""
    B, nin = x.shape
    nh = params["w1"].shape[1]
    nout = params["w4"].shape[1]

    # ---- pad feature dims to lane multiples (128) for lane-dense compute/stores.
    nin_p = _round_up(nin, 128)
    nh_p = _round_up(nh, 128)
    nout_p = _round_up(nout, 128)

    def pad2(a, rows, cols):
        return jnp.pad(a, ((0, rows - a.shape[0]), (0, cols - a.shape[1])))

    # bf16 matmul operands (weights); biases stay f32 for the f32 epilogue.
    w1 = pad2(params["w1"], nin_p, nh_p).astype(jnp.bfloat16)
    w2 = pad2(params["w2"], nh_p, nh_p).astype(jnp.bfloat16)
    w3 = pad2(params["w3"], nh_p, nh_p).astype(jnp.bfloat16)
    w4 = pad2(params["w4"], nh_p, nout_p).astype(jnp.bfloat16)
    b1 = pad2(params["b1"], 1, nh_p).astype(jnp.float32)
    b2 = pad2(params["b2"], 1, nh_p).astype(jnp.float32)
    b3 = pad2(params["b3"], 1, nh_p).astype(jnp.float32)
    b4 = pad2(params["b4"], 1, nout_p).astype(jnp.float32)

    # ---- batch tiling: biggest tile that fits (<=512) to amortize per-step cost;
    # multiple steps (when B is large) still shard across v7x's two cores.
    if tile_m is None:
        tile_m = min(_round_up(B, 8), 512)
    assert tile_m % 8 == 0, "tile_m must be a sublane multiple"
    B_p = _round_up(B, tile_m)
    x_p = pad2(x, B_p, nin_p).astype(jnp.bfloat16)

    grid = (B_p // tile_m,)

    def full(a):
        return pl.BlockSpec(a.shape, lambda i: (0, 0))  # grid-invariant operand

    out_p = pl.pallas_call(
        mlp4_kernel,
        out_shape=jax.ShapeDtypeStruct((B_p, nout_p), jnp.float32),
        grid_spec=pltpu.PrefetchScalarGridSpec(
            num_scalar_prefetch=0,
            grid=grid,
            in_specs=[
                pl.BlockSpec((tile_m, nin_p), lambda i: (i, 0)),  # x tile
                full(w1), full(b1),
                full(w2), full(b2),
                full(w3), full(b3),
                full(w4), full(b4),
            ],
            out_specs=pl.BlockSpec((tile_m, nout_p), lambda i: (i, 0)),
        ),
        compiler_params=pltpu.CompilerParams(
            dimension_semantics=("parallel",)),
        interpret=interpret,
    )(x_p, w1, b1, w2, b2, w3, b3, w4, b4)

    # Strip the zero padding.
    return out_p[:B, :nout]


def init_params(key, nin, nout, nh):
    """Deterministic synthetic init. Weights stored transposed: (in, out).
    Biases stored as (1, out) for clean lane-major broadcast in VMEM."""
    ks = jax.random.split(key, 8)

    def lin(kw, kb, fan_in, fan_out):
        bound = 1.0 / jnp.sqrt(fan_in)  # torch Linear default-ish
        w = jax.random.uniform(kw, (fan_in, fan_out), jnp.float32, -bound, bound)
        b = jax.random.uniform(kb, (1, fan_out), jnp.float32, -bound, bound)
        return w, b

    w1, b1 = lin(ks[0], ks[1], nin, nh)
    w2, b2 = lin(ks[2], ks[3], nh, nh)
    w3, b3 = lin(ks[4], ks[5], nh, nh)
    w4, b4 = lin(ks[6], ks[7], nh, nout)
    return dict(w1=w1, b1=b1, w2=w2, b2=b2, w3=w3, b3=b3, w4=w4, b4=b4)


def mlp4_reference(x, p, cast=None):
    """Pure-JAX reference mirroring the PyTorch forward. If `cast` is given,
    matmul operands are rounded to that dtype (to mirror the bf16 kernel)."""
    c = (lambda a: a.astype(cast)) if cast is not None else (lambda a: a)
    h = jnp.dot(c(x), c(p["w1"]), preferred_element_type=jnp.float32) + p["b1"]
    h = jnp.maximum(h, 0.2 * h)
    h = jnp.dot(c(h), c(p["w2"]), preferred_element_type=jnp.float32) + p["b2"]
    h = jnp.maximum(h, 0.2 * h)
    h = jnp.dot(c(h), c(p["w3"]), preferred_element_type=jnp.float32) + p["b3"]
    h = jnp.maximum(h, 0.2 * h)
    return jnp.dot(c(h), c(p["w4"]), preferred_element_type=jnp.float32) + p["b4"]


if __name__ == "__main__":
    key = jax.random.PRNGKey(0)
    kx, kp = jax.random.split(key)

    B, nin, nh, nout = 128, 32, 64, 16
    x = jax.random.normal(kx, (B, nin), jnp.float32)
    params = init_params(kp, nin, nout, nh)

    out = jax.block_until_ready(mlp4_forward(x, params))
    assert out.shape == (B, nout)

    # Tight check against a reference with matched bf16 operand rounding.
    ref_bf16 = mlp4_reference(x, params, cast=jnp.bfloat16)
    assert jnp.allclose(out, ref_bf16, atol=2e-3, rtol=2e-3), "mismatch vs bf16 reference"

    # Loose check against the pure-f32 PyTorch-semantics reference
    # (bf16 matmul operands => ~1e-2-level agreement expected).
    ref_f32 = mlp4_reference(x, params)
    assert jnp.allclose(out, ref_f32, atol=5e-2, rtol=5e-2), "mismatch vs f32 reference"

    print("KERNEL_OK")
</pallas_src>

<mosaic_0001>
module attributes {stable_mosaic.version = 11 : i64} {
  func.func @mlp4_kernel(%arg0: i32, %arg1: memref<128x128xbf16, #tpu.memory_space<vmem>>, %arg2: memref<128x128xbf16, #tpu.memory_space<vmem>>, %arg3: memref<1x128xf32, #tpu.memory_space<vmem>>, %arg4: memref<128x128xbf16, #tpu.memory_space<vmem>>, %arg5: memref<1x128xf32, #tpu.memory_space<vmem>>, %arg6: memref<128x128xbf16, #tpu.memory_space<vmem>>, %arg7: memref<1x128xf32, #tpu.memory_space<vmem>>, %arg8: memref<128x128xbf16, #tpu.memory_space<vmem>>, %arg9: memref<1x128xf32, #tpu.memory_space<vmem>>, %arg10: memref<128x128xf32, #tpu.memory_space<vmem>>) attributes {dimension_semantics = [#tpu.dimension_semantics<parallel>], iteration_bounds = array<i64: 1>, scalar_prefetch = 0 : i64, scratch_operands = 0 : i64, tpu.core_type = #tpu.core_type<tc>, window_params = [{transform_indices = @transform_0, window_bounds = array<i64: 128, 128>}, {pipeline_mode = #tpu.pipeline_mode<synchronous>, transform_indices = @transform_1, window_bounds = array<i64: 128, 128>}, {pipeline_mode = #tpu.pipeline_mode<synchronous>, transform_indices = @transform_2, window_bounds = array<i64: 1, 128>}, {pipeline_mode = #tpu.pipeline_mode<synchronous>, transform_indices = @transform_3, window_bounds = array<i64: 128, 128>}, {pipeline_mode = #tpu.pipeline_mode<synchronous>, transform_indices = @transform_4, window_bounds = array<i64: 1, 128>}, {pipeline_mode = #tpu.pipeline_mode<synchronous>, transform_indices = @transform_5, window_bounds = array<i64: 128, 128>}, {pipeline_mode = #tpu.pipeline_mode<synchronous>, transform_indices = @transform_6, window_bounds = array<i64: 1, 128>}, {pipeline_mode = #tpu.pipeline_mode<synchronous>, transform_indices = @transform_7, window_bounds = array<i64: 128, 128>}, {pipeline_mode = #tpu.pipeline_mode<synchronous>, transform_indices = @transform_8, window_bounds = array<i64: 1, 128>}, {transform_indices = @transform_9, window_bounds = array<i64: 128, 128>}]} {
    %c0 = arith.constant 0 : index
    %c0_0 = arith.constant 0 : index
    %0 = vector.load %arg1[%c0, %c0_0] : memref<128x128xbf16, #tpu.memory_space<vmem>>, vector<128x128xbf16>
    %c0_1 = arith.constant 0 : index
    %c0_2 = arith.constant 0 : index
    %1 = vector.load %arg2[%c0_1, %c0_2] : memref<128x128xbf16, #tpu.memory_space<vmem>>, vector<128x128xbf16>
    %cst = arith.constant dense<0.000000e+00> : vector<128x128xf32>
    %2 = tpu.matmul %0, %1, %cst {dimension_numbers = #tpu.dot_dimension_numbers<[1], [0], [0], [1], [0, 0, 1, 1], [], []>} : vector<128x128xbf16>, vector<128x128xbf16>, vector<128x128xf32> -> vector<128x128xf32>
    %c0_3 = arith.constant 0 : index
    %c0_4 = arith.constant 0 : index
    %3 = vector.load %arg3[%c0_3, %c0_4] : memref<1x128xf32, #tpu.memory_space<vmem>>, vector<1x128xf32>
    %4 = vector.broadcast %3 : vector<1x128xf32> to vector<128x128xf32>
    %5 = arith.addf %2, %4 : vector<128x128xf32>
    %cst_5 = arith.constant 2.000000e-01 : f32
    %6 = vector.broadcast %cst_5 : f32 to vector<128x128xf32>
    %7 = arith.mulf %6, %5 : vector<128x128xf32>
    %8 = arith.maximumf %5, %7 : vector<128x128xf32>
    %9 = arith.truncf %8 : vector<128x128xf32> to vector<128x128xbf16>
    %c0_6 = arith.constant 0 : index
    %c0_7 = arith.constant 0 : index
    %10 = vector.load %arg4[%c0_6, %c0_7] : memref<128x128xbf16, #tpu.memory_space<vmem>>, vector<128x128xbf16>
    %cst_8 = arith.constant dense<0.000000e+00> : vector<128x128xf32>
    %11 = tpu.matmul %9, %10, %cst_8 {dimension_numbers = #tpu.dot_dimension_numbers<[1], [0], [0], [1], [0, 0, 1, 1], [], []>} : vector<128x128xbf16>, vector<128x128xbf16>, vector<128x128xf32> -> vector<128x128xf32>
    %c0_9 = arith.constant 0 : index
    %c0_10 = arith.constant 0 : index
    %12 = vector.load %arg5[%c0_9, %c0_10] : memref<1x128xf32, #tpu.memory_space<vmem>>, vector<1x128xf32>
    %13 = vector.broadcast %12 : vector<1x128xf32> to vector<128x128xf32>
    %14 = arith.addf %11, %13 : vector<128x128xf32>
    %cst_11 = arith.constant 2.000000e-01 : f32
    %15 = vector.broadcast %cst_11 : f32 to vector<128x128xf32>
    %16 = arith.mulf %15, %14 : vector<128x128xf32>
    %17 = arith.maximumf %14, %16 : vector<128x128xf32>
    %18 = arith.truncf %17 : vector<128x128xf32> to vector<128x128xbf16>
    %c0_12 = arith.constant 0 : index
    %c0_13 = arith.constant 0 : index
    %19 = vector.load %arg6[%c0_12, %c0_13] : memref<128x128xbf16, #tpu.memory_space<vmem>>, vector<128x128xbf16>
    %cst_14 = arith.constant dense<0.000000e+00> : vector<128x128xf32>
    %20 = tpu.matmul %18, %19, %cst_14 {dimension_numbers = #tpu.dot_dimension_numbers<[1], [0], [0], [1], [0, 0, 1, 1], [], []>} : vector<128x128xbf16>, vector<128x128xbf16>, vector<128x128xf32> -> vector<128x128xf32>
    %c0_15 = arith.constant 0 : index
    %c0_16 = arith.constant 0 : index
    %21 = vector.load %arg7[%c0_15, %c0_16] : memref<1x128xf32, #tpu.memory_space<vmem>>, vector<1x128xf32>
    %22 = vector.broadcast %21 : vector<1x128xf32> to vector<128x128xf32>
    %23 = arith.addf %20, %22 : vector<128x128xf32>
    %cst_17 = arith.constant 2.000000e-01 : f32
    %24 = vector.broadcast %cst_17 : f32 to vector<128x128xf32>
    %25 = arith.mulf %24, %23 : vector<128x128xf32>
    %26 = arith.maximumf %23, %25 : vector<128x128xf32>
    %27 = arith.truncf %26 : vector<128x128xf32> to vector<128x128xbf16>
    %c0_18 = arith.constant 0 : index
    %c0_19 = arith.constant 0 : index
    %28 = vector.load %arg8[%c0_18, %c0_19] : memref<128x128xbf16, #tpu.memory_space<vmem>>, vector<128x128xbf16>
    %cst_20 = arith.constant dense<0.000000e+00> : vector<128x128xf32>
    %29 = tpu.matmul %27, %28, %cst_20 {dimension_numbers = #tpu.dot_dimension_numbers<[1], [0], [0], [1], [0, 0, 1, 1], [], []>} : vector<128x128xbf16>, vector<128x128xbf16>, vector<128x128xf32> -> vector<128x128xf32>
    %c0_21 = arith.constant 0 : index
    %c0_22 = arith.constant 0 : index
    %30 = vector.load %arg9[%c0_21, %c0_22] : memref<1x128xf32, #tpu.memory_space<vmem>>, vector<1x128xf32>
    %31 = vector.broadcast %30 : vector<1x128xf32> to vector<128x128xf32>
    %32 = arith.addf %29, %31 : vector<128x128xf32>
    %c0_23 = arith.constant 0 : index
    %c0_24 = arith.constant 0 : index
    %33 = vector.load %arg10[%c0_23, %c0_24] : memref<128x128xf32, #tpu.memory_space<vmem>>, vector<128x128xf32>
    tpu.vector_store %arg10[%c0_23, %c0_24], %32 {strides = array<i32>} : memref<128x128xf32, #tpu.memory_space<vmem>>, vector<128x128xf32>,
    return
  }
  func.func @transform_0(%arg0: i32) -> (i32, i32) {
    %c0_i32 = arith.constant 0 : i32
    %c0_i32_0 = arith.constant 0 : i32
    return %arg0, %c0_i32 : i32, i32
  }
  func.func @transform_1(%arg0: i32) -> (i32, i32) {
    %c0_i32 = arith.constant 0 : i32
    %c0_i32_0 = arith.constant 0 : i32
    %c0_i32_1 = arith.constant 0 : i32
    return %c0_i32, %c0_i32_0 : i32, i32
  }
  func.func @transform_2(%arg0: i32) -> (i32, i32) {
    %c0_i32 = arith.constant 0 : i32
    %c0_i32_0 = arith.constant 0 : i32
    %c0_i32_1 = arith.constant 0 : i32
    return %c0_i32, %c0_i32_0 : i32, i32
  }
  func.func @transform_3(%arg0: i32) -> (i32, i32) {
    %c0_i32 = arith.constant 0 : i32
    %c0_i32_0 = arith.constant 0 : i32
    %c0_i32_1 = arith.constant 0 : i32
    return %c0_i32, %c0_i32_0 : i32, i32
  }
  func.func @transform_4(%arg0: i32) -> (i32, i32) {
    %c0_i32 = arith.constant 0 : i32
    %c0_i32_0 = arith.constant 0 : i32
    %c0_i32_1 = arith.constant 0 : i32
    return %c0_i32, %c0_i32_0 : i32, i32
  }
  func.func @transform_5(%arg0: i32) -> (i32, i32) {
    %c0_i32 = arith.constant 0 : i32
    %c0_i32_0 = arith.constant 0 : i32
    %c0_i32_1 = arith.constant 0 : i32
    return %c0_i32, %c0_i32_0 : i32, i32
  }
  func.func @transform_6(%arg0: i32) -> (i32, i32) {
    %c0_i32 = arith.constant 0 : i32
    %c0_i32_0 = arith.constant 0 : i32
    %c0_i32_1 = arith.constant 0 : i32
    return %c0_i32, %c0_i32_0 : i32, i32
  }
  func.func @transform_7(%arg0: i32) -> (i32, i32) {
    %c0_i32 = arith.constant 0 : i32
    %c0_i32_0 = arith.constant 0 : i32
    %c0_i32_1 = arith.constant 0 : i32
    return %c0_i32, %c0_i32_0 : i32, i32
  }
  func.func @transform_8(%arg0: i32) -> (i32, i32) {
    %c0_i32 = arith.constant 0 : i32
    %c0_i32_0 = arith.constant 0 : i32
    %c0_i32_1 = arith.constant 0 : i32
    return %c0_i32, %c0_i32_0 : i32, i32
  }
  func.func @transform_9(%arg0: i32) -> (i32, i32) {
    %c0_i32 = arith.constant 0 : i32
    %c0_i32_0 = arith.constant 0 : i32
    return %arg0, %c0_i32 : i32, i32
  }
}

</mosaic_0001>

<bundles_post_ra>
// kernel: tpu_custom_call.1
= control target key start
LH: loop header
LB: loop body
LE: loop exit
PB: predicated region body
PF: predicated region fallthrough
CT: control target
= control target key end

     0   :  { %14 = vsyncpa [#allocation3], 0  ;;  %s1646_s0 = inlined_call_operand.hbm [shape: bf16[128,128], index: 0, kind: input, shape index: {}]   ;;  %s1647_s1 = inlined_call_operand.hbm [shape: bf16[128,128], index: 1, kind: input, shape index: {}]   ;;  %s1648_s2 = inlined_call_operand.vmem [shape: f32[1,128], index: 2, kind: input, shape index: {}]   ;;  %s1649_s3 = inlined_call_operand.hbm [shape: bf16[128,128], index: 3, kind: input, shape index: {}]   ;;  %s1650_s4 = inlined_call_operand.vmem [shape: f32[1,128], index: 4, kind: input, shape index: {}]   ;;  %s1651_s5 = inlined_call_operand.hbm [shape: bf16[128,128], index: 5, kind: input, shape index: {}]   ;;  %s1652_s6 = inlined_call_operand.vmem [shape: f32[1,128], index: 6, kind: input, shape index: {}]   ;;  %s1653_s7 = inlined_call_operand.hbm [shape: bf16[128,128], index: 7, kind: input, shape index: {}]   ;;  %s1654_s8 = inlined_call_operand.vmem [shape: f32[1,128], index: 8, kind: input, shape index: {}]   ;;  %s1655_s9 = inlined_call_operand.hbm [shape: f32[128,128], index: 9, kind: output, shape index: {}]  }
   0x1   :  { %15 = vsyncpa [#allocation6], 0 }
   0x2   :  { %16 = vsyncpa [#allocation9], 0 }
   0x3   :  { %17 = vsyncpa [#allocation4], 0  ;;  %s1419_s30 = smov [#allocation5]   ;;  %s1420_s11 = smov [#allocation8]  }
   0x4   :  { %s35_s10 = sshll.u32 %s1419_s30, 4  ;;  %s63_s12 = sshll.u32 %s1420_s11, 4  ;;  %s36_s10 = int_to_ptr.vmem [resolvable:$true] %s35_s10  ;;  %s1479_s12 = int_to_ptr.vmem [resolvable:$true] %s63_s12 }
   0x5   :  { %s1279_s15 = scalar_lea.hbm %s1647_s1, 1024 }
   0x6   :  { %p1280_p0 = scmp.ne.s32.totalorder %s1647_s1, %s1279_s15  ;;  %p1283_p1 = scmp.lt.u32.totalorder %s1279_s15, %s1647_s1 }
   0x8   :  { %p1285_p2 = pnand %p1283_p1, %p1280_p0 }
   0xa   :  { %1288 = shalt.err (!%p1285_p2)
}
   0xb   :  { %s1289_s20 = scalar_lea.vmem %s36_s10, 1024  ;;  %p1294_p4 = scmp.lt.s32.totalorder %s36_s10, %s36_s10 }
   0xc   :  { %p1290_p3 = scmp.ne.s32.totalorder %s36_s10, %s1289_s20  ;;  %p1295_p5 = scmp.lt.s32.totalorder %s1289_s20, %s1289_s20 }
   0xe   :  { %p1296_p6 = por %p1295_p5, %p1294_p4 }
  0x10   :  { %p1297_p7 = pnand %p1296_p6, %p1290_p3 }
  0x12   :  { %1300 = shalt.err (!%p1297_p7)
}
  0x13   :  { %s1421_s21 = smov 64   ;;  %s1422_s22 = smov 4  }
  0x14   :  { %41 = dma.hbm_to_vmem [thread:$0]  %s1647_s1, 1024, %s36_s10, [#allocation6], %s1421_s21, %s1421_s21, %s1422_s22  }
  0x15   :  { %s1301_s27 = scalar_lea.hbm %s1651_s5, 1024 }
  0x16   :  { %p1302_p8 = scmp.ne.s32.totalorder %s1651_s5, %s1301_s27  ;;  %p1305_p9 = scmp.lt.u32.totalorder %s1301_s27, %s1651_s5 }
  0x18   :  { %p1307_p10 = pnand %p1305_p9, %p1302_p8 }
  0x1a   :  { %1310 = shalt.err (!%p1307_p10)
}
  0x1b   :  { %s1311_s13 = scalar_lea.vmem %s1479_s12, 1024  ;;  %p1316_p12 = scmp.lt.s32.totalorder %s1479_s12, %s1479_s12 }
  0x1c   :  { %p1312_p11 = scmp.ne.s32.totalorder %s1479_s12, %s1311_s13  ;;  %p1317_p13 = scmp.lt.s32.totalorder %s1311_s13, %s1311_s13 }
  0x1e   :  { %p1318_p0 = por %p1317_p13, %p1316_p12 }
  0x20   :  { %p1319_p1 = pnand %p1318_p0, %p1312_p11 }
  0x22   :  { %1322 = shalt.err (!%p1319_p1)
}
  0x23   :  { %69 = dma.hbm_to_vmem [thread:$0]  %s1651_s5, 1024, %s1479_s12, [#allocation9], %s1421_s21, %s1421_s21, %s1422_s22  }
  0x24   :  { %s1423_s14 = smov [#allocation2]   ;;  %s1424_s16 = smov [#allocation7]  }
  0x25   :  { %s23_s15 = sshll.u32 %s1423_s14, 4  ;;  %s49_s17 = sshll.u32 %s1424_s16, 4  ;;  %s24_s15 = int_to_ptr.vmem [resolvable:$true] %s23_s15  ;;  %s1516_s17 = int_to_ptr.vmem [resolvable:$true] %s49_s17 }
  0x26   :  { %s1323_s20 = scalar_lea.hbm %s1646_s0, 1024 }
  0x27   :  { %p1324_p2 = scmp.ne.s32.totalorder %s1646_s0, %s1323_s20  ;;  %p1327_p3 = scmp.lt.u32.totalorder %s1323_s20, %s1646_s0 }
  0x29   :  { %p1329_p4 = pnand %p1327_p3, %p1324_p2 }
  0x2b   :  { %1332 = shalt.err (!%p1329_p4)
}
  0x2c   :  { %s1333_s5 = scalar_lea.vmem %s24_s15, 1024  ;;  %p1338_p6 = scmp.lt.s32.totalorder %s24_s15, %s24_s15 }
  0x2d   :  { %p1334_p5 = scmp.ne.s32.totalorder %s24_s15, %s1333_s5  ;;  %p1339_p7 = scmp.lt.s32.totalorder %s1333_s5, %s1333_s5 }
  0x2f   :  { %p1340_p8 = por %p1339_p7, %p1338_p6 }
  0x31   :  { %p1341_p9 = pnand %p1340_p8, %p1334_p5 }
  0x33   :  { %1344 = shalt.err (!%p1341_p9)
}
  0x34   :  { %29 = dma.hbm_to_vmem [thread:$0]  %s1646_s0, 1024, %s24_s15, [#allocation3], %s1421_s21, %s1421_s21, %s1422_s22  }
  0x35   :  { %s1345_s30 = scalar_lea.hbm %s1649_s3, 1024 }
  0x36   :  { %p1346_p10 = scmp.ne.s32.totalorder %s1649_s3, %s1345_s30  ;;  %p1349_p11 = scmp.lt.u32.totalorder %s1345_s30, %s1649_s3 }
  0x38   :  { %p1351_p12 = pnand %p1349_p11, %p1346_p10 }
  0x3a   :  { %1354 = shalt.err (!%p1351_p12)
}
  0x3b   :  { %s1355_s14 = scalar_lea.vmem %s1516_s17, 1024  ;;  %p1360_p0 = scmp.lt.s32.totalorder %s1516_s17, %s1516_s17 }
  0x3c   :  { %p1356_p13 = scmp.ne.s32.totalorder %s1516_s17, %s1355_s14  ;;  %p1361_p1 = scmp.lt.s32.totalorder %s1355_s14, %s1355_s14 }
  0x3e   :  { %p1362_p2 = por %p1361_p1, %p1360_p0 }
  0x40   :  { %p1363_p3 = pnand %p1362_p2, %p1356_p13 }
  0x42   :  { %1366 = shalt.err (!%p1363_p3)
}
  0x43   :  { %55 = dma.hbm_to_vmem [thread:$0]  %s1649_s3, 1024, %s1516_s17, [#allocation6], %s1421_s21, %s1421_s21, %s1422_s22  }
  0x44   :  { %s1425_s16 = smov [#allocation10]   ;;  %s1367_s23 = scalar_lea.hbm %s1653_s7, 1024 }
  0x45   :  { %s77_s18 = sshll.u32 %s1425_s16, 4  ;;  %p1368_p4 = scmp.ne.s32.totalorder %s1653_s7, %s1367_s23  ;;  %s78_s18 = int_to_ptr.vmem [resolvable:$true] %s77_s18 }
  0x46   :  { %p1371_p5 = scmp.lt.u32.totalorder %s1367_s23, %s1653_s7 }
  0x48   :  { %p1373_p6 = pnand %p1371_p5, %p1368_p4 }
  0x4a   :  { %1376 = shalt.err (!%p1373_p6)
}
  0x4b   :  { %s1377_s12 = scalar_lea.vmem %s78_s18, 1024  ;;  %p1382_p8 = scmp.lt.s32.totalorder %s78_s18, %s78_s18 }
  0x4c   :  { %p1378_p7 = scmp.ne.s32.totalorder %s78_s18, %s1377_s12  ;;  %p1383_p9 = scmp.lt.s32.totalorder %s1377_s12, %s1377_s12 }
  0x4e   :  { %p1384_p10 = por %p1383_p9, %p1382_p8 }
  0x50   :  { %p1385_p11 = pnand %p1384_p10, %p1378_p7 }
  0x52   :  { %1388 = shalt.err (!%p1385_p11)
}
  0x53   :  { %83 = dma.hbm_to_vmem [thread:$0]  %s1653_s7, 1024, %s78_s18, [#allocation9], %s1421_s21, %s1421_s21, %s1422_s22  }
  0x54   :  { %1411 = dma.done.wait [#allocation3], 1024  }
  0x55   :  { %1412 = vsyncadd [#allocation3], 4294966272 }
  0x56   :  { %1413 = dma.done.wait [#allocation6], 2048  }
  0x57   :  { %1414 = vsyncadd [#allocation6], 4294965248 }
  0x58   :  { %1415 = dma.done.wait [#allocation9], 2048  }
  0x59   :  { %1416 = vsyncadd [#allocation9], 4294965248  ;;  %v1239_v0 = vld [vmem:[#allocation5] sm:$0xff]   ;;  %v1240_v1 = vld [vmem:[#allocation5 + $0x8] sm:$0xff]  }
  0x5a   :  { %1101 = vmatprep.subr.bf16.mxu0 %v1239_v0  ;;  %v1241_v2 = vld [vmem:[#allocation5 + $0x10] sm:$0xff]   ;;  %v1242_v3 = vld [vmem:[#allocation5 + $0x18] sm:$0xff]   ;;  %v1247_v4 = vld [vmem:[#allocation2] sm:$0xff]  }
  0x5b   :  { %1102 = vmatpush3.bf16.msra.mxu0 %v1239_v0  ;;  %1117 = vmatprep.mubr.bf16.mxu0 %v1247_v4  ;;  %v1243_v5 = vld [vmem:[#allocation5 + $0x20] sm:$0xff]   ;;  %v1244_v6 = vld [vmem:[#allocation5 + $0x28] sm:$0xff]   ;;  %v1245_v9 = vld [vmem:[#allocation5 + $0x30] sm:$0xff]  }
  0x5c   :  { %1103 = vmatprep.subr.bf16.mxu0 %v1240_v1  ;;  %v1255_v7 = vld [vmem:[#allocation7] sm:$0xff]   ;;  %v1256_v8 = vld [vmem:[#allocation7 + $0x8] sm:$0xff]   ;;  %v1257_v10 = vld [vmem:[#allocation7 + $0x10] sm:$0xff]  }
  0x5d   :  { %1133 = vmatprep.subr.bf16.mxu1 %v1255_v7  ;;  %v1246_v11 = vld [vmem:[#allocation5 + $0x38] sm:$0xff]   ;;  %v1259_v13 = vld [vmem:[#allocation7 + $0x20] sm:$0xff]   ;;  %v1248_v14 = vld [vmem:[#allocation2 + $0x8] sm:$0xff]  }
  0x5e   :  { %1134 = vmatpush3.bf16.msra.mxu1 %v1255_v7  ;;  %v1258_v12 = vld [vmem:[#allocation7 + $0x18] sm:$0xff]   ;;  %v1249_v15 = vld [vmem:[#allocation2 + $0x10] sm:$0xff]   ;;  %v1251_v17 = vld [vmem:[#allocation2 + $0x20] sm:$0xff]  }
  0x5f   :  { %1104 = vmatpush3.bf16.msra.mxu0 %v1240_v1  ;;  %1135 = vmatprep.subr.bf16.mxu1 %v1256_v8  ;;  %v1250_v16 = vld [vmem:[#allocation2 + $0x18] sm:$0xff]   ;;  %v1252_v18 = vld [vmem:[#allocation2 + $0x28] sm:$0xff]   ;;  %v1253_v19 = vld [vmem:[#allocation2 + $0x30] sm:$0xff]  }
  0x60   :  { %1105 = vmatprep.subr.bf16.mxu0 %v1241_v2  ;;  %v1254_v20 = vld [vmem:[#allocation2 + $0x38] sm:$0xff]   ;;  %v1260_v21 = vld [vmem:[#allocation7 + $0x28] sm:$0xff]   ;;  %v1261_v22 = vld [vmem:[#allocation7 + $0x30] sm:$0xff]  }
  0x61   :  { %v1262_v23 = vld [vmem:[#allocation7 + $0x38] sm:$0xff]   ;;  %v1263_v24 = vld [vmem:[#allocation8] sm:$0xff]   ;;  %v1264_v25 = vld [vmem:[#allocation8 + $0x8] sm:$0xff]  }
  0x62   :  { %1136 = vmatpush3.bf16.msra.mxu1 %v1256_v8  ;;  %v1265_v26 = vld [vmem:[#allocation8 + $0x10] sm:$0xff]   ;;  %v1266_v27 = vld [vmem:[#allocation8 + $0x18] sm:$0xff]   ;;  %v1267_v28 = vld [vmem:[#allocation8 + $0x20] sm:$0xff]  }
  0x63   :  { %1106 = vmatpush3.bf16.msra.mxu0 %v1241_v2  ;;  %1137 = vmatprep.subr.bf16.mxu1 %v1257_v10  ;;  %v1571_v29 = vld [vmem:[%s1648_s2] ss:$0 sm:$0xff] }
  0x64   :  { %1107 = vmatprep.subr.bf16.mxu0 %v1242_v3 }
  0x66   :  { %1138 = vmatpush3.bf16.msra.mxu1 %v1257_v10 }
  0x67   :  { %1108 = vmatpush3.bf16.msra.mxu0 %v1242_v3  ;;  %1139 = vmatprep.subr.bf16.mxu1 %v1258_v12 }
  0x68   :  { %1109 = vmatprep.subr.bf16.mxu0 %v1243_v5 }
  0x6a   :  { %1140 = vmatpush3.bf16.msra.mxu1 %v1258_v12 }
  0x6b   :  { %1110 = vmatpush3.bf16.msra.mxu0 %v1243_v5  ;;  %1141 = vmatprep.subr.bf16.mxu1 %v1259_v13 }
  0x6c   :  { %1111 = vmatprep.subr.bf16.mxu0 %v1244_v6 }
  0x6e   :  { %1142 = vmatpush3.bf16.msra.mxu1 %v1259_v13 }
  0x6f   :  { %1112 = vmatpush3.bf16.msra.mxu0 %v1244_v6  ;;  %1143 = vmatprep.subr.bf16.mxu1 %v1260_v21 }
  0x70   :  { %1113 = vmatprep.subr.bf16.mxu0 %v1245_v9 }
  0x72   :  { %1144 = vmatpush3.bf16.msra.mxu1 %v1260_v21 }
  0x73   :  { %1114 = vmatpush3.bf16.msra.mxu0 %v1245_v9  ;;  %1145 = vmatprep.subr.bf16.mxu1 %v1261_v22 }
  0x74   :  { %1115 = vmatprep.subr.bf16.mxu0 %v1246_v11 }
  0x76   :  { %1146 = vmatpush3.bf16.msra.mxu1 %v1261_v22 }
  0x77   :  { %1116 = vmatpush3.bf16.msra.mxu0 %v1246_v11  ;;  %1147 = vmatprep.subr.bf16.mxu1 %v1262_v23 }
  0x78   :  { %1165 = vmatprep.subr.bf16.mxu0 %v1263_v24 }
  0x7a   :  { %1118 = vmatmul.mubr.bf16.vlgmr.msra.gmra.mrb[0].mxu0 %v1248_v14  ;;  %1148 = vmatpush3.bf16.msra.mxu1 %v1262_v23 }
  0x7b   :  { %1121 = vmatprep.mubr.bf16.mxu0 %v1249_v15  ;;  %1166 = vmatpush3.bf16.msra.mxu0 %v1263_v24 }
  0x7c   :  { %1167 = vmatprep.subr.bf16.mxu0 %v1264_v25 }
  0x7f   :  { %1168 = vmatpush3.bf16.msra.mxu0 %v1264_v25 }
  0x80   :  { %1169 = vmatprep.subr.bf16.mxu0 %v1265_v26 }
  0x82   :  { %1122 = vmatmul.mubr.bf16.gmra.mrb[4].mxu0 %v1250_v16 }
  0x83   :  { %1125 = vmatprep.mubr.bf16.mxu0 %v1251_v17  ;;  %1170 = vmatpush3.bf16.msra.mxu0 %v1265_v26 }
  0x84   :  { %1171 = vmatprep.subr.bf16.mxu0 %v1266_v27 }
  0x87   :  { %1172 = vmatpush3.bf16.msra.mxu0 %v1266_v27 }
  0x88   :  { %1173 = vmatprep.subr.bf16.mxu0 %v1267_v28 }
  0x8a   :  { %1126 = vmatmul.mubr.bf16.gmra.mrb[8].mxu0 %v1252_v18 }
  0x8b   :  { %1129 = vmatprep.mubr.bf16.mxu0 %v1253_v19  ;;  %1174 = vmatpush3.bf16.msra.mxu0 %v1267_v28 }
  0x92   :  { %1130 = vmatmul.mubr.bf16.gmra.mrb[12].mxu0 %v1254_v20 }
 0x14d   :  { %v1119_v30 = vpop.f32.mrb[0].mxu0 }
 0x14e   :  { %v280_v31 = vadd.f32 %v1119_v30, %v1571_v29  ;;  %v271_v32 = vpop.f32.mrb[1].mxu0 }
 0x14f   :  { %v272_v33 = vadd.f32 %v1571_v29, %v271_v32  ;;  %v1120_v34 = vpop.f32.mrb[2].mxu0 }
 0x150   :  { %v336_v35 = vmul.f32 0.2, %v280_v31  ;;  %v283_v36 = vadd.f32 %v1120_v34, %v1571_v29  ;;  %v274_v37 = vpop.f32.mrb[3].mxu0 }
 0x151   :  { %v334_v38 = vmul.f32 0.2, %v272_v33  ;;  %v275_v39 = vadd.f32 %v1571_v29, %v274_v37 }
 0x152   :  { %v337_v40 = vmul.f32 0.2, %v283_v36  ;;  %v352_v42 = vmax.f32 %v280_v31, %v336_v35 }
 0x153   :  { %v335_v41 = vmul.f32 0.2, %v275_v39  ;;  %v350_v45 = vmax.f32 %v272_v33, %v334_v38 }
 0x154   :  { %v353_v43 = vmax.f32 %v283_v36, %v337_v40  ;;  %v1269_v40 = vld [vmem:[#allocation8 + $0x30] sm:$0xff]  }
 0x155   :  { %v1123_v44 = vpop.f32.mrb[4].mxu0  ;;  %v351_v46 = vmax.f32 %v275_v39, %v335_v41  ;;  %v1268_v39 = vld [vmem:[#allocation8 + $0x28] sm:$0xff]   ;;  %v1270_v41 = vld [vmem:[#allocation8 + $0x38] sm:$0xff]  }
 0x156   :  { %v296_v47 = vadd.f32 %v1123_v44, %v1571_v29  ;;  %v287_v48 = vpop.f32.mrb[5].mxu0  ;;  %v367_v49 = vpack.c.bf16 %v353_v43, %v352_v42  ;;  %1175 = vmatprep.subr.bf16.mxu0 %v1268_v39  ;;  %v1272_v42 = vld [vmem:[#allocation10 + $0x8] sm:$0xff]   ;;  %v1273_v43 = vld [vmem:[#allocation10 + $0x10] sm:$0xff]   ;;  %v1274_v44 = vld [vmem:[#allocation10 + $0x18] sm:$0xff]  }
 0x157   :  { %v288_v50 = vadd.f32 %v1571_v29, %v287_v48  ;;  %v1124_v51 = vpop.f32.mrb[6].mxu0  ;;  %v366_v52 = vpack.c.bf16 %v351_v46, %v350_v45  ;;  %1176 = vmatpush3.bf16.msra.mxu0 %v1268_v39  ;;  %v1275_v45 = vld [vmem:[#allocation10 + $0x20] sm:$0xff]  }
 0x158   :  { %v340_v53 = vmul.f32 0.2, %v296_v47  ;;  %v299_v54 = vadd.f32 %v1124_v51, %v1571_v29  ;;  %v290_v55 = vpop.f32.mrb[7].mxu0  ;;  %1177 = vmatprep.subr.bf16.mxu0 %v1269_v40  ;;  %v1592_v46 = vld [vmem:[%s1650_s4] ss:$0 sm:$0xff] }
 0x159   :  { %v338_v56 = vmul.f32 0.2, %v288_v50  ;;  %v291_v57 = vadd.f32 %v1571_v29, %v290_v55  ;;  %1149 = vmatprep.mubr.bf16.mxu1 %v366_v52 }
 0x15a   :  { %v341_v58 = vmul.f32 0.2, %v299_v54  ;;  %1150 = vmatmul.mubr.bf16.vlgmr.msra.gmra.mrb[0].mxu1 %v367_v49  ;;  %v356_v60 = vmax.f32 %v296_v47, %v340_v53 }
 0x15b   :  { %v339_v59 = vmul.f32 0.2, %v291_v57  ;;  %v354_v62 = vmax.f32 %v288_v50, %v338_v56  ;;  %1178 = vmatpush3.bf16.msra.mxu0 %v1269_v40 }
 0x15c   :  { %v357_v61 = vmax.f32 %v299_v54, %v341_v58  ;;  %1179 = vmatprep.subr.bf16.mxu0 %v1270_v41 }
 0x15d   :  { %v355_v63 = vmax.f32 %v291_v57, %v339_v59  ;;  %v1127_v0 = vpop.f32.mrb[8].mxu0 }
 0x15e   :  { %v312_v1 = vadd.f32 %v1127_v0, %v1571_v29  ;;  %v303_v2 = vpop.f32.mrb[9].mxu0  ;;  %v369_v3 = vpack.c.bf16 %v357_v61, %v356_v60 }
 0x15f   :  { %v304_v4 = vadd.f32 %v1571_v29, %v303_v2  ;;  %v1128_v5 = vpop.f32.mrb[10].mxu0  ;;  %v368_v6 = vpack.c.bf16 %v355_v63, %v354_v62  ;;  %1180 = vmatpush3.bf16.msra.mxu0 %v1270_v41 }
 0x160   :  { %v344_v7 = vmul.f32 0.2, %v312_v1  ;;  %v315_v8 = vadd.f32 %v1128_v5, %v1571_v29  ;;  %v306_v9 = vpop.f32.mrb[11].mxu0 }
 0x161   :  { %v342_v10 = vmul.f32 0.2, %v304_v4  ;;  %v307_v11 = vadd.f32 %v1571_v29, %v306_v9  ;;  %1153 = vmatprep.mubr.bf16.mxu1 %v368_v6 }
 0x162   :  { %v345_v12 = vmul.f32 0.2, %v315_v8  ;;  %1154 = vmatmul.mubr.bf16.gmra.mrb[4].mxu1 %v369_v3  ;;  %v360_v14 = vmax.f32 %v312_v1, %v344_v7 }
 0x163   :  { %v343_v13 = vmul.f32 0.2, %v307_v11  ;;  %v358_v16 = vmax.f32 %v304_v4, %v342_v10 }
 0x164   :  { %v361_v15 = vmax.f32 %v315_v8, %v345_v12 }
 0x165   :  { %v359_v17 = vmax.f32 %v307_v11, %v343_v13  ;;  %v1131_v18 = vpop.f32.mrb[12].mxu0 }
 0x166   :  { %v328_v19 = vadd.f32 %v1131_v18, %v1571_v29  ;;  %v319_v20 = vpop.f32.mrb[13].mxu0  ;;  %v371_v21 = vpack.c.bf16 %v361_v15, %v360_v14 }
 0x167   :  { %v320_v22 = vadd.f32 %v1571_v29, %v319_v20  ;;  %v1132_v23 = vpop.f32.mrb[14].mxu0  ;;  %v370_v24 = vpack.c.bf16 %v359_v17, %v358_v16 }
 0x168   :  { %v348_v25 = vmul.f32 0.2, %v328_v19  ;;  %v331_v26 = vadd.f32 %v1132_v23, %v1571_v29  ;;  %v322_v27 = vpop.f32.mrb[15].mxu0 }
 0x169   :  { %v346_v28 = vmul.f32 0.2, %v320_v22  ;;  %v323_v30 = vadd.f32 %v1571_v29, %v322_v27  ;;  %1157 = vmatprep.mubr.bf16.mxu1 %v370_v24  ;;  %v1271_v29 = vld [vmem:[#allocation10] sm:$0xff]  }
 0x16a   :  { %v349_v31 = vmul.f32 0.2, %v331_v26  ;;  %1158 = vmatmul.mubr.bf16.gmra.mrb[8].mxu1 %v371_v21  ;;  %v364_v33 = vmax.f32 %v328_v19, %v348_v25  ;;  %1197 = vmatprep.subr.bf16.mxu1 %v1271_v29 }
 0x16b   :  { %v347_v32 = vmul.f32 0.2, %v323_v30  ;;  %v362_v35 = vmax.f32 %v320_v22, %v346_v28  ;;  %1198 = vmatpush3.bf16.msra.mxu1 %v1271_v29 }
 0x16c   :  { %v365_v34 = vmax.f32 %v331_v26, %v349_v31  ;;  %1199 = vmatprep.subr.bf16.mxu1 %v1272_v42 }
 0x16d   :  { %v363_v36 = vmax.f32 %v323_v30, %v347_v32 }
 0x16e   :  { %v373_v37 = vpack.c.bf16 %v365_v34, %v364_v33 }
 0x16f   :  { %v372_v38 = vpack.c.bf16 %v363_v36, %v362_v35  ;;  %1200 = vmatpush3.bf16.msra.mxu1 %v1272_v42 }
 0x170   :  { %1201 = vmatprep.subr.bf16.mxu1 %v1273_v43 }
 0x171   :  { %1161 = vmatprep.mubr.bf16.mxu1 %v372_v38 }
 0x172   :  { %1162 = vmatmul.mubr.bf16.gmra.mrb[12].mxu1 %v373_v37 }
 0x173   :  { %1202 = vmatpush3.bf16.msra.mxu1 %v1273_v43 }
 0x174   :  { %1203 = vmatprep.subr.bf16.mxu1 %v1274_v44 }
 0x177   :  { %1204 = vmatpush3.bf16.msra.mxu1 %v1274_v44 }
 0x178   :  { %1205 = vmatprep.subr.bf16.mxu1 %v1275_v45 }
 0x17b   :  { %1206 = vmatpush3.bf16.msra.mxu1 %v1275_v45 }
 0x22d   :  { %v1151_v47 = vpop.f32.mrb[0].mxu1 }
 0x22e   :  { %v488_v48 = vadd.f32 %v1151_v47, %v1592_v46  ;;  %v479_v49 = vpop.f32.mrb[1].mxu1 }
 0x22f   :  { %v480_v50 = vadd.f32 %v1592_v46, %v479_v49  ;;  %v1152_v51 = vpop.f32.mrb[2].mxu1 }
 0x230   :  { %v544_v52 = vmul.f32 0.2, %v488_v48  ;;  %v491_v53 = vadd.f32 %v1152_v51, %v1592_v46  ;;  %v482_v54 = vpop.f32.mrb[3].mxu1 }
 0x231   :  { %v542_v55 = vmul.f32 0.2, %v480_v50  ;;  %v483_v56 = vadd.f32 %v1592_v46, %v482_v54 }
 0x232   :  { %v545_v57 = vmul.f32 0.2, %v491_v53  ;;  %v560_v59 = vmax.f32 %v488_v48, %v544_v52 }
 0x233   :  { %v543_v58 = vmul.f32 0.2, %v483_v56  ;;  %v558_v61 = vmax.f32 %v480_v50, %v542_v55 }
 0x234   :  { %v561_v60 = vmax.f32 %v491_v53, %v545_v57  ;;  %v1277_v57 = vld [vmem:[#allocation10 + $0x30] sm:$0xff]  }
 0x235   :  { %v559_v62 = vmax.f32 %v483_v56, %v543_v58  ;;  %v1155_v63 = vpop.f32.mrb[4].mxu1  ;;  %v1276_v56 = vld [vmem:[#allocation10 + $0x28] sm:$0xff]   ;;  %v1278_v58 = vld [vmem:[#allocation10 + $0x38] sm:$0xff]  }
 0x236   :  { %v575_v0 = vpack.c.bf16 %v561_v60, %v560_v59  ;;  %v504_v1 = vadd.f32 %v1155_v63, %v1592_v46  ;;  %v495_v2 = vpop.f32.mrb[5].mxu1  ;;  %1207 = vmatprep.subr.bf16.mxu1 %v1276_v56 }
 0x237   :  { %v496_v3 = vadd.f32 %v1592_v46, %v495_v2  ;;  %v1156_v4 = vpop.f32.mrb[6].mxu1  ;;  %v574_v5 = vpack.c.bf16 %v559_v62, %v558_v61  ;;  %1208 = vmatpush3.bf16.msra.mxu1 %v1276_v56 }
 0x238   :  { %v548_v6 = vmul.f32 0.2, %v504_v1  ;;  %v507_v7 = vadd.f32 %v1156_v4, %v1592_v46  ;;  %v498_v8 = vpop.f32.mrb[7].mxu1  ;;  %1209 = vmatprep.subr.bf16.mxu1 %v1277_v57 }
 0x239   :  { %v546_v9 = vmul.f32 0.2, %v496_v3  ;;  %v499_v10 = vadd.f32 %v1592_v46, %v498_v8  ;;  %1181 = vmatprep.mubr.bf16.mxu0 %v574_v5 }
 0x23a   :  { %v549_v11 = vmul.f32 0.2, %v507_v7  ;;  %1182 = vmatmul.mubr.bf16.vlgmr.msra.gmra.mrb[16].mxu0 %v575_v0  ;;  %v564_v13 = vmax.f32 %v504_v1, %v548_v6 }
 0x23b   :  { %v547_v12 = vmul.f32 0.2, %v499_v10  ;;  %v562_v15 = vmax.f32 %v496_v3, %v546_v9  ;;  %1210 = vmatpush3.bf16.msra.mxu1 %v1277_v57 }
 0x23c   :  { %v565_v14 = vmax.f32 %v507_v7, %v549_v11  ;;  %1211 = vmatprep.subr.bf16.mxu1 %v1278_v58 }
 0x23d   :  { %v563_v16 = vmax.f32 %v499_v10, %v547_v12  ;;  %v1159_v17 = vpop.f32.mrb[8].mxu1 }
 0x23e   :  { %v520_v18 = vadd.f32 %v1159_v17, %v1592_v46  ;;  %v511_v19 = vpop.f32.mrb[9].mxu1  ;;  %v577_v20 = vpack.c.bf16 %v565_v14, %v564_v13 }
 0x23f   :  { %v512_v21 = vadd.f32 %v1592_v46, %v511_v19  ;;  %v1160_v22 = vpop.f32.mrb[10].mxu1  ;;  %v576_v23 = vpack.c.bf16 %v563_v16, %v562_v15  ;;  %1212 = vmatpush3.bf16.msra.mxu1 %v1278_v58 }
 0x240   :  { %v552_v24 = vmul.f32 0.2, %v520_v18  ;;  %v523_v25 = vadd.f32 %v1160_v22, %v1592_v46  ;;  %v514_v26 = vpop.f32.mrb[11].mxu1 }
 0x241   :  { %v550_v27 = vmul.f32 0.2, %v512_v21  ;;  %v515_v28 = vadd.f32 %v1592_v46, %v514_v26  ;;  %1185 = vmatprep.mubr.bf16.mxu0 %v576_v23 }
 0x242   :  { %v553_v30 = vmul.f32 0.2, %v523_v25  ;;  %1186 = vmatmul.mubr.bf16.gmra.mrb[20].mxu0 %v577_v20  ;;  %v568_v32 = vmax.f32 %v520_v18, %v552_v24 }
 0x243   :  { %v551_v31 = vmul.f32 0.2, %v515_v28  ;;  %v566_v34 = vmax.f32 %v512_v21, %v550_v27 }
 0x244   :  { %v569_v33 = vmax.f32 %v523_v25, %v553_v30 }
 0x245   :  { %v567_v35 = vmax.f32 %v515_v28, %v551_v31  ;;  %v1163_v36 = vpop.f32.mrb[12].mxu1 }
 0x246   :  { %v536_v37 = vadd.f32 %v1163_v36, %v1592_v46  ;;  %v527_v38 = vpop.f32.mrb[13].mxu1  ;;  %v579_v39 = vpack.c.bf16 %v569_v33, %v568_v32 }
 0x247   :  { %v528_v40 = vadd.f32 %v1592_v46, %v527_v38  ;;  %v1164_v41 = vpop.f32.mrb[14].mxu1  ;;  %v578_v29 = vpack.c.bf16 %v567_v35, %v566_v34 }
 0x248   :  { %v556_v42 = vmul.f32 0.2, %v536_v37  ;;  %v539_v43 = vadd.f32 %v1164_v41, %v1592_v46  ;;  %v530_v44 = vpop.f32.mrb[15].mxu1 }
 0x249   :  { %v554_v45 = vmul.f32 0.2, %v528_v40  ;;  %v531_v47 = vadd.f32 %v1592_v46, %v530_v44  ;;  %1189 = vmatprep.mubr.bf16.mxu0 %v578_v29  ;;  %v1613_v46 = vld [vmem:[%s1652_s6] ss:$0 sm:$0xff] }
 0x24a   :  { %v557_v48 = vmul.f32 0.2, %v539_v43  ;;  %1190 = vmatmul.mubr.bf16.gmra.mrb[24].mxu0 %v579_v39  ;;  %v572_v50 = vmax.f32 %v536_v37, %v556_v42 }
 0x24b   :  { %v555_v49 = vmul.f32 0.2, %v531_v47  ;;  %v570_v52 = vmax.f32 %v528_v40, %v554_v45 }
 0x24c   :  { %v573_v51 = vmax.f32 %v539_v43, %v557_v48 }
 0x24d   :  { %v571_v53 = vmax.f32 %v531_v47, %v555_v49 }
 0x24e   :  { %v581_v54 = vpack.c.bf16 %v573_v51, %v572_v50 }
 0x24f   :  { %v580_v55 = vpack.c.bf16 %v571_v53, %v570_v52 }
 0x251   :  { %1193 = vmatprep.mubr.bf16.mxu0 %v580_v55 }
 0x252   :  { %1194 = vmatmul.mubr.bf16.gmra.mrb[28].mxu0 %v581_v54 }
 0x30d   :  { %v1183_v59 = vpop.f32.mrb[16].mxu0 }
 0x30e   :  { %v696_v60 = vadd.f32 %v1183_v59, %v1613_v46  ;;  %v687_v61 = vpop.f32.mrb[17].mxu0 }
 0x30f   :  { %v688_v62 = vadd.f32 %v1613_v46, %v687_v61  ;;  %v1184_v63 = vpop.f32.mrb[18].mxu0 }
 0x310   :  { %v752_v0 = vmul.f32 0.2, %v696_v60  ;;  %v699_v1 = vadd.f32 %v1184_v63, %v1613_v46  ;;  %v690_v2 = vpop.f32.mrb[19].mxu0 }
 0x311   :  { %v750_v3 = vmul.f32 0.2, %v688_v62  ;;  %v691_v4 = vadd.f32 %v1613_v46, %v690_v2 }
 0x312   :  { %v753_v5 = vmul.f32 0.2, %v699_v1  ;;  %v768_v7 = vmax.f32 %v696_v60, %v752_v0 }
 0x313   :  { %v751_v6 = vmul.f32 0.2, %v691_v4  ;;  %v766_v9 = vmax.f32 %v688_v62, %v750_v3 }
 0x314   :  { %v769_v8 = vmax.f32 %v699_v1, %v753_v5 }
 0x315   :  { %v767_v10 = vmax.f32 %v691_v4, %v751_v6  ;;  %v1187_v11 = vpop.f32.mrb[20].mxu0  ;;  %v1028_v4 = vld [vmem:[%s1654_s8] ss:$0 sm:$0xff]  ;;  %s1426_s8 = smov [#allocation11]  }
 0x316   :  { %v783_v12 = vpack.c.bf16 %v769_v8, %v768_v7  ;;  %v712_v13 = vadd.f32 %v1187_v11, %v1613_v46  ;;  %v703_v14 = vpop.f32.mrb[21].mxu0  ;;  %s979_s29 = sshll.u32 %s1426_s8, 4  ;;  %s980_s29 = int_to_ptr.vmem [resolvable:$true] %s979_s29 }
 0x317   :  { %v704_v15 = vadd.f32 %v1613_v46, %v703_v14  ;;  %v1188_v16 = vpop.f32.mrb[22].mxu0  ;;  %v782_v17 = vpack.c.bf16 %v767_v10, %v766_v9  ;;  %s1389_s30 = scalar_lea.vmem %s980_s29, 2048  ;;  %p1394_p13 = scmp.lt.s32.totalorder %s980_s29, %s980_s29 }
 0x318   :  { %v756_v18 = vmul.f32 0.2, %v712_v13  ;;  %v715_v19 = vadd.f32 %v1188_v16, %v1613_v46  ;;  %v706_v20 = vpop.f32.mrb[23].mxu0  ;;  %p1390_p12 = scmp.ne.s32.totalorder %s980_s29, %s1389_s30  ;;  %p1395_p0 = scmp.lt.s32.totalorder %s1389_s30, %s1389_s30 }
 0x319   :  { %v754_v21 = vmul.f32 0.2, %v704_v15  ;;  %v707_v22 = vadd.f32 %v1613_v46, %v706_v20  ;;  %1213 = vmatprep.mubr.bf16.mxu1 %v782_v17 }
 0x31a   :  { %v757_v23 = vmul.f32 0.2, %v715_v19  ;;  %1214 = vmatmul.mubr.bf16.vlgmr.msra.gmra.mrb[16].mxu1 %v783_v12  ;;  %v772_v25 = vmax.f32 %v712_v13, %v756_v18  ;;  %p1396_p1 = por %p1395_p0, %p1394_p13 }
 0x31b   :  { %v755_v24 = vmul.f32 0.2, %v707_v22  ;;  %v770_v27 = vmax.f32 %v704_v15, %v754_v21 }
 0x31c   :  { %v773_v26 = vmax.f32 %v715_v19, %v757_v23  ;;  %p1397_p2 = pnand %p1396_p1, %p1390_p12 }
 0x31d   :  { %v771_v28 = vmax.f32 %v707_v22, %v755_v24  ;;  %v1191_v30 = vpop.f32.mrb[24].mxu0 }
 0x31e   :  { %v728_v31 = vadd.f32 %v1191_v30, %v1613_v46  ;;  %v719_v32 = vpop.f32.mrb[25].mxu0  ;;  %v785_v33 = vpack.c.bf16 %v773_v26, %v772_v25 }
 0x31f   :  { %v720_v34 = vadd.f32 %v1613_v46, %v719_v32  ;;  %v1192_v35 = vpop.f32.mrb[26].mxu0  ;;  %v784_v36 = vpack.c.bf16 %v771_v28, %v770_v27 }
 0x320   :  { %v760_v37 = vmul.f32 0.2, %v728_v31  ;;  %v731_v38 = vadd.f32 %v1192_v35, %v1613_v46  ;;  %v722_v39 = vpop.f32.mrb[27].mxu0 }
 0x321   :  { %v758_v40 = vmul.f32 0.2, %v720_v34  ;;  %v723_v41 = vadd.f32 %v1613_v46, %v722_v39  ;;  %1217 = vmatprep.mubr.bf16.mxu1 %v784_v36 }
 0x322   :  { %v761_v29 = vmul.f32 0.2, %v731_v38  ;;  %1218 = vmatmul.mubr.bf16.gmra.mrb[20].mxu1 %v785_v33  ;;  %v776_v43 = vmax.f32 %v728_v31, %v760_v37 }
 0x323   :  { %v759_v42 = vmul.f32 0.2, %v723_v41  ;;  %v774_v45 = vmax.f32 %v720_v34, %v758_v40 }
 0x324   :  { %v777_v44 = vmax.f32 %v731_v38, %v761_v29 }
 0x325   :  { %v775_v47 = vmax.f32 %v723_v41, %v759_v42  ;;  %v1195_v48 = vpop.f32.mrb[28].mxu0 }
 0x326   :  { %v744_v49 = vadd.f32 %v1195_v48, %v1613_v46  ;;  %v735_v50 = vpop.f32.mrb[29].mxu0  ;;  %v787_v51 = vpack.c.bf16 %v777_v44, %v776_v43 }
 0x327   :  { %v736_v52 = vadd.f32 %v1613_v46, %v735_v50  ;;  %v1196_v53 = vpop.f32.mrb[30].mxu0  ;;  %v786_v54 = vpack.c.bf16 %v775_v47, %v774_v45 }
 0x328   :  { %v764_v55 = vmul.f32 0.2, %v744_v49  ;;  %v747_v56 = vadd.f32 %v1196_v53, %v1613_v46  ;;  %v738_v57 = vpop.f32.mrb[31].mxu0 }
 0x329   :  { %v762_v58 = vmul.f32 0.2, %v736_v52  ;;  %v739_v59 = vadd.f32 %v1613_v46, %v738_v57  ;;  %1221 = vmatprep.mubr.bf16.mxu1 %v786_v54 }
 0x32a   :  { %v765_v60 = vmul.f32 0.2, %v747_v56  ;;  %1222 = vmatmul.mubr.bf16.gmra.mrb[24].mxu1 %v787_v51  ;;  %v780_v62 = vmax.f32 %v744_v49, %v764_v55 }
 0x32b   :  { %v763_v61 = vmul.f32 0.2, %v739_v59  ;;  %v778_v0 = vmax.f32 %v736_v52, %v762_v58 }
 0x32c   :  { %v781_v63 = vmax.f32 %v747_v56, %v765_v60 }
 0x32d   :  { %v779_v1 = vmax.f32 %v739_v59, %v763_v61 }
 0x32e   :  { %v789_v2 = vpack.c.bf16 %v781_v63, %v780_v62 }
 0x32f   :  { %v788_v3 = vpack.c.bf16 %v779_v1, %v778_v0 }
 0x331   :  { %1225 = vmatprep.mubr.bf16.mxu1 %v788_v3 }
 0x332   :  { %1226 = vmatmul.mubr.bf16.gmra.mrb[28].mxu1 %v789_v2 }
 0x3ed   :  { %v1215_v5 = vpop.f32.mrb[16].mxu1 }
 0x3ee   :  { %v904_v6 = vadd.f32 %v1215_v5, %v1028_v4  ;;  %v895_v7 = vpop.f32.mrb[17].mxu1 }
 0x3ef   :  { %v896_v46 = vadd.f32 %v1028_v4, %v895_v7  ;;  %v1216_v8 = vpop.f32.mrb[18].mxu1 }
 0x3f0   :  { %960 = vst [vmem:[#allocation11 + $0x10] sm:$0xff] %v904_v6  ;;  %v907_v9 = vadd.f32 %v1216_v8, %v1028_v4  ;;  %v898_v10 = vpop.f32.mrb[19].mxu1 }
 0x3f1   :  { %958 = vst [vmem:[#allocation11] sm:$0xff] %v896_v46  ;;  %v899_v11 = vadd.f32 %v1028_v4, %v898_v10 }
 0x3f2   :  { %961 = vst [vmem:[#allocation11 + $0x18] sm:$0xff] %v907_v9 }
 0x3f3   :  { %959 = vst [vmem:[#allocation11 + $0x8] sm:$0xff] %v899_v11 }
 0x3f5   :  { %v1219_v12 = vpop.f32.mrb[20].mxu1 }
 0x3f6   :  { %v920_v13 = vadd.f32 %v1219_v12, %v1028_v4  ;;  %v911_v14 = vpop.f32.mrb[21].mxu1 }
 0x3f7   :  { %v912_v15 = vadd.f32 %v1028_v4, %v911_v14  ;;  %v1220_v16 = vpop.f32.mrb[22].mxu1 }
 0x3f8   :  { %964 = vst [vmem:[#allocation11 + $0x30] sm:$0xff] %v920_v13  ;;  %v923_v17 = vadd.f32 %v1220_v16, %v1028_v4  ;;  %v914_v18 = vpop.f32.mrb[23].mxu1 }
 0x3f9   :  { %962 = vst [vmem:[#allocation11 + $0x20] sm:$0xff] %v912_v15  ;;  %v915_v19 = vadd.f32 %v1028_v4, %v914_v18 }
 0x3fa   :  { %965 = vst [vmem:[#allocation11 + $0x38] sm:$0xff] %v923_v17 }
 0x3fb   :  { %963 = vst [vmem:[#allocation11 + $0x28] sm:$0xff] %v915_v19 }
 0x3fd   :  { %v1223_v20 = vpop.f32.mrb[24].mxu1 }
 0x3fe   :  { %v936_v21 = vadd.f32 %v1223_v20, %v1028_v4  ;;  %v927_v22 = vpop.f32.mrb[25].mxu1 }
 0x3ff   :  { %v928_v23 = vadd.f32 %v1028_v4, %v927_v22  ;;  %v1224_v24 = vpop.f32.mrb[26].mxu1 }
 0x400   :  { %968 = vst [vmem:[#allocation11 + $0x50] sm:$0xff] %v936_v21  ;;  %v939_v25 = vadd.f32 %v1224_v24, %v1028_v4  ;;  %v930_v26 = vpop.f32.mrb[27].mxu1 }
 0x401   :  { %966 = vst [vmem:[#allocation11 + $0x40] sm:$0xff] %v928_v23  ;;  %v931_v27 = vadd.f32 %v1028_v4, %v930_v26 }
 0x402   :  { %969 = vst [vmem:[#allocation11 + $0x58] sm:$0xff] %v939_v25 }
 0x403   :  { %967 = vst [vmem:[#allocation11 + $0x48] sm:$0xff] %v931_v27 }
 0x405   :  { %v1227_v28 = vpop.f32.mrb[28].mxu1 }
 0x406   :  { %v952_v30 = vadd.f32 %v1227_v28, %v1028_v4  ;;  %v943_v31 = vpop.f32.mrb[29].mxu1 }
 0x407   :  { %v944_v32 = vadd.f32 %v1028_v4, %v943_v31  ;;  %v1228_v33 = vpop.f32.mrb[30].mxu1 }
 0x408   :  { %972 = vst [vmem:[#allocation11 + $0x70] sm:$0xff] %v952_v30  ;;  %v955_v34 = vadd.f32 %v1228_v33, %v1028_v4  ;;  %v946_v35 = vpop.f32.mrb[31].mxu1 }
 0x409   :  { %970 = vst [vmem:[#allocation11 + $0x60] sm:$0xff] %v944_v32  ;;  %v947_v36 = vadd.f32 %v1028_v4, %v946_v35 }
 0x40a   :  { %973 = vst [vmem:[#allocation11 + $0x78] sm:$0xff] %v955_v34 }
 0x40b   :  { %971 = vst [vmem:[#allocation11 + $0x68] sm:$0xff] %v947_v36 }
 0x40c   :  { %1400 = shalt.err (!%p1397_p2)
}
 0x40d   :  { %s1401_s1 = scalar_lea.hbm %s1655_s9, 2048 }
 0x40e   :  { %p1402_p3 = scmp.ne.s32.totalorder %s1655_s9, %s1401_s1  ;;  %p1405_p4 = scmp.lt.u32.totalorder %s1401_s1, %s1655_s9 }
 0x410   :  { %p1407_p5 = pnand %p1405_p4, %p1402_p3 }
 0x412   :  { %1410 = shalt.err (!%p1407_p5)
}
 0x413   :  { %s1427_s16 = smov 128   ;;  %s1428_s18 = smov 8  }
 0x414   :  { %985 = dma.vmem_to_hbm [thread:$0]  %s980_s29, 2048, %s1655_s9, [#allocation4], %s1427_s16, %s1427_s16, %s1428_s18  }
 0x415   :  { %1417 = dma.done.wait [#allocation4], 2048  }
 0x416   :  { %1418 = vsyncadd [#allocation4], 4294965248 }
 0x417   :  { %989 = vsyncpa [#allocation3], 1 }
 0x418   :  { %990 = vsyncpa [#allocation6], 1 }
 0x419   :  { %991 = vsyncpa [#allocation9], 1 }
 0x41a   :  { %992 = vsyncpa [#allocation4], 1 }

</bundles_post_ra>
